<compile_context>
chip_gen: v7x
topology: tpu7x:2x2x1
jax: 0.10.0
libtpu: 0.0.40
codegen_flags: <defaults>
</compile_context>

<pallas_src>
import functools

import jax
import jax.numpy as jnp
from jax.experimental import pallas as pl
from jax.experimental.pallas import tpu as pltpu

LN_EPS = 1e-5
LANE = 128
SUBLANE = 8


def _round_up(x, m):
    return (x + m - 1) // m * m


def _cdiv(a, b):
    return -(-a // b)


def _pad_axis(a, axis, new_size):
    pad = new_size - a.shape[axis]
    if pad == 0:
        return a
    widths = [(0, 0)] * a.ndim
    widths[axis] = (0, pad)
    return jnp.pad(a, widths)


# ----------------------------------------------------------------------------
# Fused kernel: the whole MLP stack for one batch tile.
# ----------------------------------------------------------------------------
def fused_mlp_kernel(*refs, n_blocks, hidden_size):
    # refs layout: x, w_0..w_{n_blocks-1}, vecs, w_out, b_out, o
    x_ref = refs[0]
    w_refs = refs[1:1 + n_blocks]
    vecs_ref = refs[1 + n_blocks]      # (3*n_blocks, h_pad) f32: [b, gamma, beta]*
    w_out_ref = refs[2 + n_blocks]
    b_out_ref = refs[3 + n_blocks]
    o_ref = refs[4 + n_blocks]

    inv_h = 1.0 / float(hidden_size)

    h = x_ref[...].astype(jnp.float32)
    for i in range(n_blocks):  # statically unrolled (n_blocks is trace-time const)
        b = vecs_ref[3 * i:3 * i + 1, :]        # (1, h_pad)
        g = vecs_ref[3 * i + 1:3 * i + 2, :]
        be = vecs_ref[3 * i + 2:3 * i + 3, :]
        # bf16 MXU matmul, f32 accumulation. Padded lanes/rows of W are zero.
        a = jnp.dot(h.astype(jnp.bfloat16), w_refs[i][...],
                    preferred_element_type=jnp.float32) + b
        a = jnp.maximum(a, 0.0)  # ReLU; padded lanes are exactly 0
        # LayerNorm stats over the real hidden features only: padded lanes of `a`
        # contribute 0 to both sums, divisor is the real hidden_size.
        mean = jnp.sum(a, axis=-1, keepdims=True) * inv_h
        ex2 = jnp.sum(a * a, axis=-1, keepdims=True) * inv_h
        var = ex2 - mean * mean                 # biased var (torch LayerNorm)
        # gamma/beta are 0 on padded lanes, so padded activations stay exactly 0.
        h = (a - mean) * jax.lax.rsqrt(var + LN_EPS) * g + be

    out = jnp.dot(h.astype(jnp.bfloat16), w_out_ref[...],
                  preferred_element_type=jnp.float32) + b_out_ref[...]
    o_ref[...] = out.astype(o_ref.dtype)


# ----------------------------------------------------------------------------
# Parameter init (mimics PyTorch nn.Linear default U(-k, k)), unpadded, f32.
# ----------------------------------------------------------------------------
def init_linear(key, fan_in, fan_out, dtype=jnp.float32):
    kw, kb = jax.random.split(key)
    k = 1.0 / jnp.sqrt(jnp.asarray(fan_in, dtype))
    w = jax.random.uniform(kw, (fan_in, fan_out), dtype, minval=-k, maxval=k)
    b = jax.random.uniform(kb, (1, fan_out), dtype, minval=-k, maxval=k)
    return w, b


def init_params(key, input_size, output_size, hidden_size, n_hidden_layers,
                dtype=jnp.float32):
    keys = jax.random.split(key, n_hidden_layers + 2)
    blocks = []
    w, b = init_linear(keys[0], input_size, hidden_size, dtype)
    blocks.append({"w": w, "b": b,
                   "gamma": jnp.ones((1, hidden_size), dtype),
                   "beta": jnp.zeros((1, hidden_size), dtype)})
    for i in range(n_hidden_layers):
        w, b = init_linear(keys[1 + i], hidden_size, hidden_size, dtype)
        blocks.append({"w": w, "b": b,
                       "gamma": jnp.ones((1, hidden_size), dtype),
                       "beta": jnp.zeros((1, hidden_size), dtype)})
    w, b = init_linear(keys[-1], hidden_size, output_size, dtype)
    return {"blocks": blocks, "out": {"w": w, "b": b}}


def prepare_params(params, hidden_size, output_size):
    """Pad hidden dims to lane width with zeros, cast weights to bf16, stack the
    per-layer bias/gamma/beta rows into one f32 array. Done once, up front."""
    h_pad = _round_up(hidden_size, LANE)
    ws, vec_rows = [], []
    for idx, blk in enumerate(params["blocks"]):
        w = blk["w"]
        if idx > 0:                       # first layer keeps K = real input_size
            w = _pad_axis(w, 0, h_pad)
        ws.append(_pad_axis(w, 1, h_pad).astype(jnp.bfloat16))
        vec_rows += [_pad_axis(blk["b"], 1, h_pad),
                     _pad_axis(blk["gamma"], 1, h_pad),
                     _pad_axis(blk["beta"], 1, h_pad)]
    vecs = jnp.concatenate(vec_rows, axis=0)                 # (3*n_blocks, h_pad) f32
    w_out = _pad_axis(params["out"]["w"], 0, h_pad).astype(jnp.bfloat16)
    b_out = params["out"]["b"]                               # (1, output_size) f32
    return {"ws": ws, "vecs": vecs, "w_out": w_out, "b_out": b_out}


# ----------------------------------------------------------------------------
# Tile selection: multiple-of-8, >= 2 grid steps when batch allows (v7x 2 TCs),
# exact-divisor preference to bound batch-padding waste to < 1 tile.
# ----------------------------------------------------------------------------
def _choose_tile(batch, tile_b):
    b8 = _round_up(max(batch, 1), SUBLANE)
    tile = min(_round_up(tile_b, SUBLANE), b8)
    if tile == b8 and b8 > SUBLANE:            # split so both v7x cores get work
        tile = _round_up(_cdiv(b8, 2), SUBLANE)
    t = tile
    while t >= max(SUBLANE, tile // 2):        # prefer a tile dividing b8 exactly
        if b8 % t == 0:
            tile = t
            break
        t -= SUBLANE
    b_pad = _round_up(b8, tile)
    return tile, b_pad


# ----------------------------------------------------------------------------
# Forward pass: one fused pallas_call, gridded over the batch.
# ----------------------------------------------------------------------------
@functools.partial(jax.jit,
                   static_argnames=("hidden_size", "output_size", "tile_b"))
def fully_connected_forward(x, kparams, *, hidden_size, output_size,
                            tile_b=256):
    B, input_size = x.shape
    out_dtype = x.dtype
    ws = kparams["ws"]
    n_blocks = len(ws)
    h_pad = ws[0].shape[1]

    tile, b_pad = _choose_tile(B, tile_b)
    xp = x if b_pad == B else jnp.pad(x, ((0, b_pad - B), (0, 0)))

    const_blk = lambda i: (0, 0)   # weights: same block every step -> VMEM resident
    in_specs = [pl.BlockSpec((tile, input_size), lambda i: (i, 0))]
    flat_inputs = [xp]
    for w in ws:
        in_specs.append(pl.BlockSpec(w.shape, const_blk))
        flat_inputs.append(w)
    for name in ("vecs", "w_out", "b_out"):
        arr = kparams[name]
        in_specs.append(pl.BlockSpec(arr.shape, const_blk))
        flat_inputs.append(arr)

    flops = 2 * b_pad * (input_size * h_pad + (n_blocks - 1) * h_pad * h_pad
                         + h_pad * output_size)
    bytes_accessed = (sum(int(a.size) * a.dtype.itemsize for a in flat_inputs)
                      + b_pad * output_size * jnp.dtype(out_dtype).itemsize)
    cost = pl.CostEstimate(flops=flops,
                           transcendentals=b_pad * n_blocks,
                           bytes_accessed=bytes_accessed)

    kernel = functools.partial(fused_mlp_kernel, n_blocks=n_blocks,
                               hidden_size=hidden_size)
    out = pl.pallas_call(
        kernel,
        out_shape=jax.ShapeDtypeStruct((b_pad, output_size), out_dtype),
        grid=(b_pad // tile,),
        in_specs=in_specs,
        out_specs=pl.BlockSpec((tile, output_size), lambda i: (i, 0)),
        compiler_params=pltpu.CompilerParams(
            dimension_semantics=("parallel",)),
        cost_estimate=cost,
    )(*flat_inputs)

    return out[:B] if b_pad != B else out


# ----------------------------------------------------------------------------
# Pure-JAX references (unpadded params) for a sanity check.
# ----------------------------------------------------------------------------
def _ref_forward(x, params, matmul_dtype=jnp.float32):
    h = x
    for blk in params["blocks"]:
        a = jnp.dot(h.astype(matmul_dtype), blk["w"].astype(matmul_dtype),
                    preferred_element_type=jnp.float32) + blk["b"]
        a = jnp.maximum(a, 0.0)
        mean = jnp.mean(a, axis=-1, keepdims=True)
        var = jnp.mean(a * a, axis=-1, keepdims=True) - mean * mean
        h = (a - mean) * jax.lax.rsqrt(var + LN_EPS) * blk["gamma"] + blk["beta"]
    return jnp.dot(h.astype(matmul_dtype), params["out"]["w"].astype(matmul_dtype),
                   preferred_element_type=jnp.float32) + params["out"]["b"]


if __name__ == "__main__":
    input_size, output_size, hidden_size, n_hidden_layers = 32, 16, 64, 2
    batch = 8

    key = jax.random.PRNGKey(0)
    kx, kp = jax.random.split(key)
    x = jax.random.normal(kx, (batch, input_size), jnp.float32)
    params = init_params(kp, input_size, output_size, hidden_size,
                         n_hidden_layers)
    kparams = prepare_params(params, hidden_size, output_size)

    out = fully_connected_forward(x, kparams, hidden_size=hidden_size,
                                  output_size=output_size, tile_b=256)
    out = jax.block_until_ready(out)

    ref_bf16 = _ref_forward(x, params, matmul_dtype=jnp.bfloat16)  # same quantization
    ref_f32 = _ref_forward(x, params, matmul_dtype=jnp.float32)    # module semantics

    assert out.shape == (batch, output_size)
    assert jnp.allclose(out, ref_bf16, atol=2e-3, rtol=2e-3), (
        float(jnp.max(jnp.abs(out - ref_bf16))))
    assert jnp.allclose(out, ref_f32, atol=1e-1, rtol=1e-1), (
        float(jnp.max(jnp.abs(out - ref_f32))))

    print("KERNEL_OK")
</pallas_src>

<mosaic_0001>
module attributes {stable_mosaic.version = 11 : i64} {
  func.func @fused_mlp_kernel(%arg0: i32, %arg1: memref<8x32xf32, #tpu.memory_space<vmem>>, %arg2: memref<32x128xbf16, #tpu.memory_space<vmem>>, %arg3: memref<128x128xbf16, #tpu.memory_space<vmem>>, %arg4: memref<128x128xbf16, #tpu.memory_space<vmem>>, %arg5: memref<9x128xf32, #tpu.memory_space<vmem>>, %arg6: memref<128x16xbf16, #tpu.memory_space<vmem>>, %arg7: memref<1x16xf32, #tpu.memory_space<vmem>>, %arg8: memref<8x16xf32, #tpu.memory_space<vmem>>) attributes {dimension_semantics = [#tpu.dimension_semantics<parallel>], iteration_bounds = array<i64: 1>, scalar_prefetch = 0 : i64, scratch_operands = 0 : i64, tpu.core_type = #tpu.core_type<tc>, window_params = [{transform_indices = @transform_0, window_bounds = array<i64: 8, 32>}, {pipeline_mode = #tpu.pipeline_mode<synchronous>, transform_indices = @transform_1, window_bounds = array<i64: 32, 128>}, {pipeline_mode = #tpu.pipeline_mode<synchronous>, transform_indices = @transform_2, window_bounds = array<i64: 128, 128>}, {pipeline_mode = #tpu.pipeline_mode<synchronous>, transform_indices = @transform_3, window_bounds = array<i64: 128, 128>}, {pipeline_mode = #tpu.pipeline_mode<synchronous>, transform_indices = @transform_4, window_bounds = array<i64: 9, 128>}, {pipeline_mode = #tpu.pipeline_mode<synchronous>, transform_indices = @transform_5, window_bounds = array<i64: 128, 16>}, {pipeline_mode = #tpu.pipeline_mode<synchronous>, transform_indices = @transform_6, window_bounds = array<i64: 1, 16>}, {transform_indices = @transform_7, window_bounds = array<i64: 8, 16>}]} {
    %c0 = arith.constant 0 : index
    %c0_0 = arith.constant 0 : index
    %0 = vector.load %arg1[%c0, %c0_0] : memref<8x32xf32, #tpu.memory_space<vmem>>, vector<8x32xf32>
    %c0_1 = arith.constant 0 : index
    %c0_2 = arith.constant 0 : index
    %1 = vector.load %arg5[%c0_1, %c0_2] : memref<9x128xf32, #tpu.memory_space<vmem>>, vector<1x128xf32>
    %c1 = arith.constant 1 : index
    %c0_3 = arith.constant 0 : index
    %2 = vector.load %arg5[%c1, %c0_3] : memref<9x128xf32, #tpu.memory_space<vmem>>, vector<1x128xf32>
    %c2 = arith.constant 2 : index
    %c0_4 = arith.constant 0 : index
    %3 = vector.load %arg5[%c2, %c0_4] : memref<9x128xf32, #tpu.memory_space<vmem>>, vector<1x128xf32>
    %4 = arith.truncf %0 : vector<8x32xf32> to vector<8x32xbf16>
    %c0_5 = arith.constant 0 : index
    %c0_6 = arith.constant 0 : index
    %5 = vector.load %arg2[%c0_5, %c0_6] : memref<32x128xbf16, #tpu.memory_space<vmem>>, vector<32x128xbf16>
    %cst = arith.constant dense<0.000000e+00> : vector<8x128xf32>
    %6 = tpu.matmul %4, %5, %cst {dimension_numbers = #tpu.dot_dimension_numbers<[1], [0], [0], [1], [0, 0, 1, 1], [], []>} : vector<8x32xbf16>, vector<32x128xbf16>, vector<8x128xf32> -> vector<8x128xf32>
    %7 = vector.broadcast %1 : vector<1x128xf32> to vector<8x128xf32>
    %8 = arith.addf %6, %7 : vector<8x128xf32>
    %cst_7 = arith.constant 0.000000e+00 : f32
    %9 = vector.broadcast %cst_7 : f32 to vector<8x128xf32>
    %10 = arith.maximumf %8, %9 : vector<8x128xf32>
    %cst_8 = arith.constant dense<0.000000e+00> : vector<8xf32>
    %11 = vector.multi_reduction <add>, %10, %cst_8 [1] : vector<8x128xf32> to vector<8xf32>
    %12 = vector.shape_cast %11 : vector<8xf32> to vector<8x1xf32>
    %cst_9 = arith.constant 1.562500e-02 : f32
    %13 = vector.broadcast %cst_9 : f32 to vector<8x1xf32>
    %14 = arith.mulf %12, %13 : vector<8x1xf32>
    %15 = arith.mulf %10, %10 : vector<8x128xf32>
    %cst_10 = arith.constant dense<0.000000e+00> : vector<8xf32>
    %16 = vector.multi_reduction <add>, %15, %cst_10 [1] : vector<8x128xf32> to vector<8xf32>
    %17 = vector.shape_cast %16 : vector<8xf32> to vector<8x1xf32>
    %cst_11 = arith.constant 1.562500e-02 : f32
    %18 = vector.broadcast %cst_11 : f32 to vector<8x1xf32>
    %19 = arith.mulf %17, %18 : vector<8x1xf32>
    %20 = arith.mulf %14, %14 : vector<8x1xf32>
    %21 = arith.subf %19, %20 : vector<8x1xf32>
    %22 = vector.broadcast %14 : vector<8x1xf32> to vector<8x128xf32>
    %23 = arith.subf %10, %22 : vector<8x128xf32>
    %cst_12 = arith.constant 9.99999974E-6 : f32
    %24 = vector.broadcast %cst_12 : f32 to vector<8x1xf32>
    %25 = arith.addf %21, %24 : vector<8x1xf32>
    %26 = math.rsqrt %25 : vector<8x1xf32>
    %27 = vector.broadcast %26 : vector<8x1xf32> to vector<8x128xf32>
    %28 = arith.mulf %23, %27 : vector<8x128xf32>
    %29 = vector.broadcast %2 : vector<1x128xf32> to vector<8x128xf32>
    %30 = arith.mulf %28, %29 : vector<8x128xf32>
    %31 = vector.broadcast %3 : vector<1x128xf32> to vector<8x128xf32>
    %32 = arith.addf %30, %31 : vector<8x128xf32>
    %c3 = arith.constant 3 : index
    %c0_13 = arith.constant 0 : index
    %33 = vector.load %arg5[%c3, %c0_13] : memref<9x128xf32, #tpu.memory_space<vmem>>, vector<1x128xf32>
    %c4 = arith.constant 4 : index
    %c0_14 = arith.constant 0 : index
    %34 = vector.load %arg5[%c4, %c0_14] : memref<9x128xf32, #tpu.memory_space<vmem>>, vector<1x128xf32>
    %c5 = arith.constant 5 : index
    %c0_15 = arith.constant 0 : index
    %35 = vector.load %arg5[%c5, %c0_15] : memref<9x128xf32, #tpu.memory_space<vmem>>, vector<1x128xf32>
    %36 = arith.truncf %32 : vector<8x128xf32> to vector<8x128xbf16>
    %c0_16 = arith.constant 0 : index
    %c0_17 = arith.constant 0 : index
    %37 = vector.load %arg3[%c0_16, %c0_17] : memref<128x128xbf16, #tpu.memory_space<vmem>>, vector<128x128xbf16>
    %cst_18 = arith.constant dense<0.000000e+00> : vector<8x128xf32>
    %38 = tpu.matmul %36, %37, %cst_18 {dimension_numbers = #tpu.dot_dimension_numbers<[1], [0], [0], [1], [0, 0, 1, 1], [], []>} : vector<8x128xbf16>, vector<128x128xbf16>, vector<8x128xf32> -> vector<8x128xf32>
    %39 = vector.broadcast %33 : vector<1x128xf32> to vector<8x128xf32>
    %40 = arith.addf %38, %39 : vector<8x128xf32>
    %cst_19 = arith.constant 0.000000e+00 : f32
    %41 = vector.broadcast %cst_19 : f32 to vector<8x128xf32>
    %42 = arith.maximumf %40, %41 : vector<8x128xf32>
    %cst_20 = arith.constant dense<0.000000e+00> : vector<8xf32>
    %43 = vector.multi_reduction <add>, %42, %cst_20 [1] : vector<8x128xf32> to vector<8xf32>
    %44 = vector.shape_cast %43 : vector<8xf32> to vector<8x1xf32>
    %cst_21 = arith.constant 1.562500e-02 : f32
    %45 = vector.broadcast %cst_21 : f32 to vector<8x1xf32>
    %46 = arith.mulf %44, %45 : vector<8x1xf32>
    %47 = arith.mulf %42, %42 : vector<8x128xf32>
    %cst_22 = arith.constant dense<0.000000e+00> : vector<8xf32>
    %48 = vector.multi_reduction <add>, %47, %cst_22 [1] : vector<8x128xf32> to vector<8xf32>
    %49 = vector.shape_cast %48 : vector<8xf32> to vector<8x1xf32>
    %cst_23 = arith.constant 1.562500e-02 : f32
    %50 = vector.broadcast %cst_23 : f32 to vector<8x1xf32>
    %51 = arith.mulf %49, %50 : vector<8x1xf32>
    %52 = arith.mulf %46, %46 : vector<8x1xf32>
    %53 = arith.subf %51, %52 : vector<8x1xf32>
    %54 = vector.broadcast %46 : vector<8x1xf32> to vector<8x128xf32>
    %55 = arith.subf %42, %54 : vector<8x128xf32>
    %cst_24 = arith.constant 9.99999974E-6 : f32
    %56 = vector.broadcast %cst_24 : f32 to vector<8x1xf32>
    %57 = arith.addf %53, %56 : vector<8x1xf32>
    %58 = math.rsqrt %57 : vector<8x1xf32>
    %59 = vector.broadcast %58 : vector<8x1xf32> to vector<8x128xf32>
    %60 = arith.mulf %55, %59 : vector<8x128xf32>
    %61 = vector.broadcast %34 : vector<1x128xf32> to vector<8x128xf32>
    %62 = arith.mulf %60, %61 : vector<8x128xf32>
    %63 = vector.broadcast %35 : vector<1x128xf32> to vector<8x128xf32>
    %64 = arith.addf %62, %63 : vector<8x128xf32>
    %c6 = arith.constant 6 : index
    %c0_25 = arith.constant 0 : index
    %65 = vector.load %arg5[%c6, %c0_25] : memref<9x128xf32, #tpu.memory_space<vmem>>, vector<1x128xf32>
    %c7 = arith.constant 7 : index
    %c0_26 = arith.constant 0 : index
    %66 = vector.load %arg5[%c7, %c0_26] : memref<9x128xf32, #tpu.memory_space<vmem>>, vector<1x128xf32>
    %c8 = arith.constant 8 : index
    %c0_27 = arith.constant 0 : index
    %67 = vector.load %arg5[%c8, %c0_27] : memref<9x128xf32, #tpu.memory_space<vmem>>, vector<1x128xf32>
    %68 = arith.truncf %64 : vector<8x128xf32> to vector<8x128xbf16>
    %c0_28 = arith.constant 0 : index
    %c0_29 = arith.constant 0 : index
    %69 = vector.load %arg4[%c0_28, %c0_29] : memref<128x128xbf16, #tpu.memory_space<vmem>>, vector<128x128xbf16>
    %cst_30 = arith.constant dense<0.000000e+00> : vector<8x128xf32>
    %70 = tpu.matmul %68, %69, %cst_30 {dimension_numbers = #tpu.dot_dimension_numbers<[1], [0], [0], [1], [0, 0, 1, 1], [], []>} : vector<8x128xbf16>, vector<128x128xbf16>, vector<8x128xf32> -> vector<8x128xf32>
    %71 = vector.broadcast %65 : vector<1x128xf32> to vector<8x128xf32>
    %72 = arith.addf %70, %71 : vector<8x128xf32>
    %cst_31 = arith.constant 0.000000e+00 : f32
    %73 = vector.broadcast %cst_31 : f32 to vector<8x128xf32>
    %74 = arith.maximumf %72, %73 : vector<8x128xf32>
    %cst_32 = arith.constant dense<0.000000e+00> : vector<8xf32>
    %75 = vector.multi_reduction <add>, %74, %cst_32 [1] : vector<8x128xf32> to vector<8xf32>
    %76 = vector.shape_cast %75 : vector<8xf32> to vector<8x1xf32>
    %cst_33 = arith.constant 1.562500e-02 : f32
    %77 = vector.broadcast %cst_33 : f32 to vector<8x1xf32>
    %78 = arith.mulf %76, %77 : vector<8x1xf32>
    %79 = arith.mulf %74, %74 : vector<8x128xf32>
    %cst_34 = arith.constant dense<0.000000e+00> : vector<8xf32>
    %80 = vector.multi_reduction <add>, %79, %cst_34 [1] : vector<8x128xf32> to vector<8xf32>
    %81 = vector.shape_cast %80 : vector<8xf32> to vector<8x1xf32>
    %cst_35 = arith.constant 1.562500e-02 : f32
    %82 = vector.broadcast %cst_35 : f32 to vector<8x1xf32>
    %83 = arith.mulf %81, %82 : vector<8x1xf32>
    %84 = arith.mulf %78, %78 : vector<8x1xf32>
    %85 = arith.subf %83, %84 : vector<8x1xf32>
    %86 = vector.broadcast %78 : vector<8x1xf32> to vector<8x128xf32>
    %87 = arith.subf %74, %86 : vector<8x128xf32>
    %cst_36 = arith.constant 9.99999974E-6 : f32
    %88 = vector.broadcast %cst_36 : f32 to vector<8x1xf32>
    %89 = arith.addf %85, %88 : vector<8x1xf32>
    %90 = math.rsqrt %89 : vector<8x1xf32>
    %91 = vector.broadcast %90 : vector<8x1xf32> to vector<8x128xf32>
    %92 = arith.mulf %87, %91 : vector<8x128xf32>
    %93 = vector.broadcast %66 : vector<1x128xf32> to vector<8x128xf32>
    %94 = arith.mulf %92, %93 : vector<8x128xf32>
    %95 = vector.broadcast %67 : vector<1x128xf32> to vector<8x128xf32>
    %96 = arith.addf %94, %95 : vector<8x128xf32>
    %97 = arith.truncf %96 : vector<8x128xf32> to vector<8x128xbf16>
    %c0_37 = arith.constant 0 : index
    %c0_38 = arith.constant 0 : index
    %98 = vector.load %arg6[%c0_37, %c0_38] : memref<128x16xbf16, #tpu.memory_space<vmem>>, vector<128x16xbf16>
    %cst_39 = arith.constant dense<0.000000e+00> : vector<8x16xf32>
    %99 = tpu.matmul %97, %98, %cst_39 {dimension_numbers = #tpu.dot_dimension_numbers<[1], [0], [0], [1], [0, 0, 1, 1], [], []>} : vector<8x128xbf16>, vector<128x16xbf16>, vector<8x16xf32> -> vector<8x16xf32>
    %c0_40 = arith.constant 0 : index
    %c0_41 = arith.constant 0 : index
    %100 = vector.load %arg7[%c0_40, %c0_41] : memref<1x16xf32, #tpu.memory_space<vmem>>, vector<1x16xf32>
    %101 = vector.broadcast %100 : vector<1x16xf32> to vector<8x16xf32>
    %102 = arith.addf %99, %101 : vector<8x16xf32>
    %c0_42 = arith.constant 0 : index
    %c0_43 = arith.constant 0 : index
    %103 = vector.load %arg8[%c0_42, %c0_43] : memref<8x16xf32, #tpu.memory_space<vmem>>, vector<8x16xf32>
    tpu.vector_store %arg8[%c0_42, %c0_43], %102 {strides = array<i32>} : memref<8x16xf32, #tpu.memory_space<vmem>>, vector<8x16xf32>,
    return
  }
  func.func @transform_0(%arg0: i32) -> (i32, i32) {
    %c0_i32 = arith.constant 0 : i32
    %c0_i32_0 = arith.constant 0 : i32
    return %arg0, %c0_i32 : i32, i32
  }
  func.func @transform_1(%arg0: i32) -> (i32, i32) {
    %c0_i32 = arith.constant 0 : i32
    %c0_i32_0 = arith.constant 0 : i32
    %c0_i32_1 = arith.constant 0 : i32
    return %c0_i32, %c0_i32_0 : i32, i32
  }
  func.func @transform_2(%arg0: i32) -> (i32, i32) {
    %c0_i32 = arith.constant 0 : i32
    %c0_i32_0 = arith.constant 0 : i32
    %c0_i32_1 = arith.constant 0 : i32
    return %c0_i32, %c0_i32_0 : i32, i32
  }
  func.func @transform_3(%arg0: i32) -> (i32, i32) {
    %c0_i32 = arith.constant 0 : i32
    %c0_i32_0 = arith.constant 0 : i32
    %c0_i32_1 = arith.constant 0 : i32
    return %c0_i32, %c0_i32_0 : i32, i32
  }
  func.func @transform_4(%arg0: i32) -> (i32, i32) {
    %c0_i32 = arith.constant 0 : i32
    %c0_i32_0 = arith.constant 0 : i32
    %c0_i32_1 = arith.constant 0 : i32
    return %c0_i32, %c0_i32_0 : i32, i32
  }
  func.func @transform_5(%arg0: i32) -> (i32, i32) {
    %c0_i32 = arith.constant 0 : i32
    %c0_i32_0 = arith.constant 0 : i32
    %c0_i32_1 = arith.constant 0 : i32
    return %c0_i32, %c0_i32_0 : i32, i32
  }
  func.func @transform_6(%arg0: i32) -> (i32, i32) {
    %c0_i32 = arith.constant 0 : i32
    %c0_i32_0 = arith.constant 0 : i32
    %c0_i32_1 = arith.constant 0 : i32
    return %c0_i32, %c0_i32_0 : i32, i32
  }
  func.func @transform_7(%arg0: i32) -> (i32, i32) {
    %c0_i32 = arith.constant 0 : i32
    %c0_i32_0 = arith.constant 0 : i32
    return %arg0, %c0_i32 : i32, i32
  }
}

</mosaic_0001>

<bundles_post_ra>
// kernel: fully_connected_forward.1
= control target key start
LH: loop header
LB: loop body
LE: loop exit
PB: predicated region body
PF: predicated region fallthrough
CT: control target
= control target key end

     0   :  { %12 = vsyncpa [#allocation3], 0  ;;  %s978_s0 = inlined_call_operand.vmem [shape: f32[8,32], index: 0, kind: input, shape index: {}]   ;;  %s979_s1 = inlined_call_operand.vmem [shape: bf16[32,128], index: 1, kind: input, shape index: {}]   ;;  %s980_s2 = inlined_call_operand.vmem [shape: bf16[128,128], index: 2, kind: input, shape index: {}]   ;;  %s981_s3 = inlined_call_operand.hbm [shape: bf16[128,128], index: 3, kind: input, shape index: {}]   ;;  %s982_s4 = inlined_call_operand.hbm [shape: f32[9,128], index: 4, kind: input, shape index: {}]   ;;  %s983_s5 = inlined_call_operand.vmem [shape: bf16[128,16], index: 5, kind: input, shape index: {}]   ;;  %s984_s6 = inlined_call_operand.vmem [shape: f32[1,16], index: 6, kind: input, shape index: {}]   ;;  %s985_s7 = inlined_call_operand.hbm [shape: f32[8,16], index: 7, kind: output, shape index: {}]  }
   0x1   :  { %13 = vsyncpa [#allocation6], 0 }
   0x2   :  { %14 = vsyncpa [#allocation4], 0  ;;  %s799_s24 = smov [#allocation2]   ;;  %s727_s28 = scalar_lea.hbm %s981_s3, 1024 }
   0x3   :  { %s26_s25 = sshll.u32 %s799_s24, 4  ;;  %p728_p0 = scmp.ne.s32.totalorder %s981_s3, %s727_s28  ;;  %s27_s25 = int_to_ptr.vmem [resolvable:$true] %s26_s25 }
   0x4   :  { %p731_p1 = scmp.lt.u32.totalorder %s727_s28, %s981_s3 }
   0x6   :  { %p733_p2 = pnand %p731_p1, %p728_p0 }
   0x8   :  { %736 = shalt.err (!%p733_p2)
}
   0x9   :  { %s737_s10 = scalar_lea.vmem %s27_s25, 1024  ;;  %p742_p4 = scmp.lt.s32.totalorder %s27_s25, %s27_s25 }
   0xa   :  { %p738_p3 = scmp.ne.s32.totalorder %s27_s25, %s737_s10  ;;  %p743_p5 = scmp.lt.s32.totalorder %s737_s10, %s737_s10 }
   0xc   :  { %p744_p6 = por %p743_p5, %p742_p4 }
   0xe   :  { %p745_p7 = pnand %p744_p6, %p738_p3 }
  0x10   :  { %748 = shalt.err (!%p745_p7)
}
  0x11   :  { %s800_s11 = smov 64   ;;  %s801_s12 = smov 4  }
  0x12   :  { %32 = dma.hbm_to_vmem [thread:$0]  %s981_s3, 1024, %s27_s25, [#allocation3], %s800_s11, %s800_s11, %s801_s12  }
  0x13   :  { %s802_s15 = smov [#allocation5]   ;;  %s749_s19 = scalar_lea.hbm %s982_s4, 256 }
  0x14   :  { %s38_s16 = sshll.u32 %s802_s15, 4  ;;  %p750_p8 = scmp.ne.s32.totalorder %s982_s4, %s749_s19  ;;  %s39_s16 = int_to_ptr.vmem [resolvable:$true] %s38_s16 }
  0x15   :  { %p753_p9 = scmp.lt.u32.totalorder %s749_s19, %s982_s4 }
  0x17   :  { %p755_p10 = pnand %p753_p9, %p750_p8 }
  0x19   :  { %758 = shalt.err (!%p755_p10)
}
  0x1a   :  { %s759_s24 = scalar_lea.vmem %s39_s16, 256  ;;  %p764_p12 = scmp.lt.s32.totalorder %s39_s16, %s39_s16 }
  0x1b   :  { %p760_p11 = scmp.ne.s32.totalorder %s39_s16, %s759_s24  ;;  %p765_p13 = scmp.lt.s32.totalorder %s759_s24, %s759_s24 }
  0x1d   :  { %p766_p0 = por %p765_p13, %p764_p12 }
  0x1f   :  { %p767_p1 = pnand %p766_p0, %p760_p11 }
  0x21   :  { %770 = shalt.err (!%p767_p1)
}
  0x22   :  { %s803_s3 = smov 128   ;;  %s804_s25 = smov 8  }
  0x23   :  { %44 = dma.hbm_to_vmem [thread:$0]  %s982_s4, 256, %s39_s16, [#allocation6], %s803_s3, %s803_s3, %s804_s25  }
  0x24   :  { %793 = dma.done.wait [#allocation3], 1024  }
  0x25   :  { %794 = vsyncadd [#allocation3], 4294966272 }
  0x26   :  { %795 = dma.done.wait [#allocation6], 256  }
  0x27   :  { %796 = vsyncadd [#allocation6], 4294967040  ;;  %v805_v0 = vmov 0.0   ;;  %vm806_vm0 = vmmov 0   ;;  %v695_v1 = vld [vmem:[%s979_s1] sm:$0xff]   ;;  %v696_v2 = vld [vmem:[%s979_s1 + $0x8] sm:$0xff]  }
  0x28   :  { %618 = vmatprep.subr.bf16.mxu0 %v805_v0  ;;  %622 = vmatprep.mubr.msk.bf16.mxu0 %vm806_vm0, %v805_v0  ;;  %v56_v3 = vld [vmem:[%s978_s0] sm:$0xff]  ;;  %vm81_vm1 = vcmask 261120   ;;  %v698_v14 = vld [vmem:[%s980_s2 + $0x8] sm:$0xff]   ;;  %v699_v15 = vld [vmem:[%s980_s2 + $0x10] sm:$0xff]   ;;  %s807_s13 = smov [#allocation7]   ;;  %vm533_vm2 = vcmask 130048  }
  0x29   :  { %626 = vmatprep.subr.bf16.mxu1 %v805_v0  ;;  %642 = vmatprep.mubr.msk.bf16.mxu1 %vm806_vm0, %v805_v0  ;;  %v60_v4 = vpack.c.bf16 %v56_v3, %v56_v3  ;;  %v697_v5 = vld [vmem:[%s980_s2] sm:$0xff]   ;;  %v700_v16 = vld [vmem:[%s980_s2 + $0x18] sm:$0xff]   ;;  %v702_v18 = vld [vmem:[%s980_s2 + $0x28] sm:$0xff]   ;;  %s541_s14 = sshll.u32 %s807_s13, 4  ;;  %s542_s14 = int_to_ptr.vmem [resolvable:$true] %s541_s14 }
  0x2a   :  { %619 = vmatpush3.bf16.msra.mxu0 %v695_v1  ;;  %627 = vmatpush3.bf16.msra.mxu1 %v697_v5  ;;  %v551_v6 = vld [vmem:[#allocation5] ss:$0 sm:$0xff]  ;;  %v703_v19 = vld [vmem:[%s980_s2 + $0x30] sm:$0xff]   ;;  %v704_v20 = vld [vmem:[%s980_s2 + $0x38] sm:$0xff]   ;;  %s771_s15 = scalar_lea.vmem %s542_s14, 128  ;;  %p776_p3 = scmp.lt.s32.totalorder %s542_s14, %s542_s14 }
  0x2b   :  { %620 = vmatprep.subr.bf16.mxu0 %v805_v0  ;;  %628 = vmatprep.subr.bf16.mxu1 %v805_v0  ;;  %v701_v17 = vld [vmem:[%s980_s2 + $0x20] sm:$0xff]   ;;  %v706_v45 = vld [vmem:[#allocation2 + $0x8] sm:$0xff]   ;;  %v707_v46 = vld [vmem:[#allocation2 + $0x10] sm:$0xff]   ;;  %p772_p2 = scmp.ne.s32.totalorder %s542_s14, %s771_s15  ;;  %p777_p4 = scmp.lt.s32.totalorder %s771_s15, %s771_s15 }
  0x2c   :  { %v555_v30 = vld [vmem:[#allocation5 + $0x1] ss:$0 sm:$0xff]  ;;  %v556_v32 = vld [vmem:[#allocation5 + $0x2] ss:$0 sm:$0xff]  ;;  %v557_v37 = vld [vmem:[#allocation5 + $0x3] ss:$0 sm:$0xff] }
  0x2d   :  { %v705_v36 = vld [vmem:[#allocation2] sm:$0xff]   ;;  %v708_v47 = vld [vmem:[#allocation2 + $0x18] sm:$0xff]   ;;  %v710_v49 = vld [vmem:[#allocation2 + $0x28] sm:$0xff]   ;;  %p778_p5 = por %p777_p4, %p776_p3 }
  0x2e   :  { %621 = vmatpush3.bf16.msra.mxu0 %v696_v2  ;;  %629 = vmatpush3.bf16.msra.mxu1 %v698_v14  ;;  %v709_v48 = vld [vmem:[#allocation2 + $0x20] sm:$0xff]   ;;  %v711_v50 = vld [vmem:[#allocation2 + $0x30] sm:$0xff]   ;;  %v712_v51 = vld [vmem:[#allocation2 + $0x38] sm:$0xff]  }
  0x2f   :  { %646 = vmatprep.subr.bf16.mxu0 %v805_v0  ;;  %630 = vmatprep.subr.bf16.mxu1 %v805_v0  ;;  %v566_v61 = vld [vmem:[#allocation5 + $0x4] ss:$0 sm:$0xff]  ;;  %v567_v63 = vld [vmem:[#allocation5 + $0x5] ss:$0 sm:$0xff]  ;;  %v568_v5 = vld [vmem:[#allocation5 + $0x6] ss:$0 sm:$0xff]  ;;  %p779_p6 = pnand %p778_p5, %p772_p2 }
  0x30   :  { %v715_v14 = vld [vmem:[%s983_s5 + $0x10] sm:$0xff]  }
  0x31   :  { %623 = vmatmul.mubr.msk.bf16.vlgmr.msra.gmra.mrb[0].mxu0 %vm81_vm1, %v60_v4  ;;  %v713_v4 = vld [vmem:[%s983_s5] sm:$0xff]  }
  0x32   :  { %662 = vmatprep.mubr.msk.bf16.mxu0 %vm806_vm0, %v805_v0  ;;  %631 = vmatpush3.bf16.msra.mxu1 %v699_v15  ;;  %v716_v15 = vld [vmem:[%s983_s5 + $0x18] sm:$0xff]  }
  0x33   :  { %632 = vmatprep.subr.bf16.mxu1 %v805_v0  ;;  %647 = vmatpush3.bf16.msra.mxu0 %v705_v36 }
  0x34   :  { %648 = vmatprep.subr.bf16.mxu0 %v805_v0 }
  0x36   :  { %633 = vmatpush3.bf16.msra.mxu1 %v700_v16  ;;  %v717_v16 = vld [vmem:[%s983_s5 + $0x20] sm:$0xff]  }
  0x37   :  { %634 = vmatprep.subr.bf16.mxu1 %v805_v0  ;;  %649 = vmatpush3.bf16.msra.mxu0 %v706_v45 }
  0x38   :  { %650 = vmatprep.subr.bf16.mxu0 %v805_v0 }
  0x3a   :  { %635 = vmatpush3.bf16.msra.mxu1 %v701_v17  ;;  %v718_v17 = vld [vmem:[%s983_s5 + $0x28] sm:$0xff]  }
  0x3b   :  { %636 = vmatprep.subr.bf16.mxu1 %v805_v0  ;;  %651 = vmatpush3.bf16.msra.mxu0 %v707_v46 }
  0x3c   :  { %652 = vmatprep.subr.bf16.mxu0 %v805_v0 }
  0x3e   :  { %637 = vmatpush3.bf16.msra.mxu1 %v702_v18  ;;  %v719_v18 = vld [vmem:[%s983_s5 + $0x30] sm:$0xff]  }
  0x3f   :  { %638 = vmatprep.subr.bf16.mxu1 %v805_v0  ;;  %653 = vmatpush3.bf16.msra.mxu0 %v708_v47 }
  0x40   :  { %654 = vmatprep.subr.bf16.mxu0 %v805_v0 }
  0x42   :  { %639 = vmatpush3.bf16.msra.mxu1 %v703_v19  ;;  %v720_v19 = vld [vmem:[%s983_s5 + $0x38] sm:$0xff]  }
  0x43   :  { %640 = vmatprep.subr.bf16.mxu1 %v805_v0  ;;  %655 = vmatpush3.bf16.msra.mxu0 %v709_v48 }
  0x44   :  { %656 = vmatprep.subr.bf16.mxu0 %v805_v0 }
  0x46   :  { %641 = vmatpush3.bf16.msra.mxu1 %v704_v20 }
  0x47   :  { %666 = vmatprep.subr.bf16.mxu1 %v805_v0  ;;  %657 = vmatpush3.bf16.msra.mxu0 %v710_v49 }
  0x48   :  { %658 = vmatprep.subr.bf16.mxu0 %v805_v0 }
  0x4b   :  { %659 = vmatpush3.bf16.msra.mxu0 %v711_v50 }
  0x4c   :  { %660 = vmatprep.subr.bf16.mxu0 %v805_v0 }
  0x4f   :  { %661 = vmatpush3.bf16.msra.mxu0 %v712_v51 }
 0x104   :  { %v119_v7 = vpop.f32.mrb[0].mxu0 }
 0x105   :  { %v120_v8 = vadd.f32 %v551_v6, %v119_v7  ;;  %v624_v9 = vpop.f32.mrb[1].mxu0 }
 0x106   :  { %v122_v10 = vpop.f32.mrb[2].mxu0 }
 0x107   :  { %v125_v11 = vmax.f32 %v120_v8, 0.0  ;;  %v625_v12 = vpop.f32.mrb[3].mxu0 }
 0x109   :  { %126 = vadd.xlane.f32.xlu0 %v125_v11  ;;  %v129_v13 = vmul.f32 %v125_v11, %v125_v11 }
 0x10d   :  { %130 = vadd.xlane.f32.xlu0 %v129_v13  ;;  %v714_v13 = vld [vmem:[%s983_s5 + $0x8] sm:$0xff]  }
 0x196   :  { %v127_v21 = vpop.xlane.xlu0 %126 }
 0x197   :  { %v128_v22 = vmul.f32 0.015625, %v127_v21 }
 0x199   :  { %v133_v24 = vmul.f32 %v128_v22, %v128_v22  ;;  %v135_v28 = vsub.f32 %v125_v11, %v128_v22 }
 0x19a   :  { %v131_v23 = vpop.xlane.xlu0 %130 }
 0x19b   :  { %v132_v25 = vmul.f32 0.015625, %v131_v23 }
 0x19d   :  { %v134_v26 = vsub.f32 %v132_v25, %v133_v24 }
 0x19f   :  { %v136_v27 = vadd.f32 1e-05, %v134_v26 }
 0x1a1   :  { %721 = vrsqrt.f32 %v136_v27 }
 0x1ab   :  { %v722_v29 = vpop.eup %721 }
 0x1ac   :  { %v138_v31 = vmul.f32 %v722_v29, %v135_v28  ;;  %v577_v29 = vld [vmem:[#allocation5 + $0x7] ss:$0 sm:$0xff] }
 0x1ae   :  { %v143_v33 = vmul.f32 %v555_v30, %v138_v31  ;;  %v578_v31 = vld [vmem:[#allocation5 + $0x8] ss:$0 sm:$0xff] }
 0x1b0   :  { %v148_v34 = vadd.f32 %v556_v32, %v143_v33 }
 0x1b2   :  { %v152_v35 = vpack.c.bf16 %v148_v34, %v148_v34 }
 0x1b4   :  { %643 = vmatmul.mubr.bf16.vlgmr.msra.gmra.mrb[0].mxu1 %v152_v35 }
 0x1b5   :  { %682 = vmatprep.mubr.msk.bf16.mxu1 %vm806_vm0, %v805_v0  ;;  %667 = vmatpush3.bf16.msra.mxu1 %v713_v4 }
 0x1b6   :  { %668 = vmatprep.subr.bf16.mxu1 %v805_v0 }
 0x1b9   :  { %669 = vmatpush3.bf16.msra.mxu1 %v714_v13 }
 0x1ba   :  { %670 = vmatprep.subr.bf16.mxu1 %v805_v0 }
 0x1bd   :  { %671 = vmatpush3.bf16.msra.mxu1 %v715_v14 }
 0x1be   :  { %672 = vmatprep.subr.bf16.mxu1 %v805_v0 }
 0x1c1   :  { %673 = vmatpush3.bf16.msra.mxu1 %v716_v15 }
 0x1c2   :  { %674 = vmatprep.subr.bf16.mxu1 %v805_v0 }
 0x1c5   :  { %675 = vmatpush3.bf16.msra.mxu1 %v717_v16 }
 0x1c6   :  { %676 = vmatprep.subr.bf16.mxu1 %v805_v0 }
 0x1c9   :  { %677 = vmatpush3.bf16.msra.mxu1 %v718_v17 }
 0x1ca   :  { %678 = vmatprep.subr.bf16.mxu1 %v805_v0 }
 0x1cd   :  { %679 = vmatpush3.bf16.msra.mxu1 %v719_v18 }
 0x1ce   :  { %680 = vmatprep.subr.bf16.mxu1 %v805_v0  ;;  %v579_v0 = vld [vmem:[%s984_s6] ss:$0 sm:$0xff] }
 0x1d1   :  { %681 = vmatpush3.bf16.msra.mxu1 %v720_v19 }
 0x287   :  { %v255_v38 = vpop.f32.mrb[0].mxu1 }
 0x288   :  { %v256_v39 = vadd.f32 %v557_v37, %v255_v38  ;;  %v644_v40 = vpop.f32.mrb[1].mxu1 }
 0x289   :  { %v258_v41 = vpop.f32.mrb[2].mxu1 }
 0x28a   :  { %v261_v42 = vmax.f32 %v256_v39, 0.0  ;;  %v645_v43 = vpop.f32.mrb[3].mxu1 }
 0x28c   :  { %262 = vadd.xlane.f32.xlu1 %v261_v42  ;;  %v265_v44 = vmul.f32 %v261_v42, %v261_v42 }
 0x290   :  { %266 = vadd.xlane.f32.xlu1 %v265_v44 }
 0x319   :  { %v263_v52 = vpop.xlane.xlu1 %262 }
 0x31a   :  { %v264_v53 = vmul.f32 0.015625, %v263_v52 }
 0x31c   :  { %v269_v55 = vmul.f32 %v264_v53, %v264_v53  ;;  %v271_v59 = vsub.f32 %v261_v42, %v264_v53 }
 0x31d   :  { %v267_v54 = vpop.xlane.xlu1 %266 }
 0x31e   :  { %v268_v56 = vmul.f32 0.015625, %v267_v54 }
 0x320   :  { %v270_v57 = vsub.f32 %v268_v56, %v269_v55 }
 0x322   :  { %v272_v58 = vadd.f32 1e-05, %v270_v57 }
 0x324   :  { %723 = vrsqrt.f32 %v272_v58 }
 0x32e   :  { %v724_v60 = vpop.eup %723 }
 0x32f   :  { %v274_v62 = vmul.f32 %v724_v60, %v271_v59 }
 0x331   :  { %v279_v1 = vmul.f32 %v566_v61, %v274_v62 }
 0x333   :  { %v284_v2 = vadd.f32 %v567_v63, %v279_v1 }
 0x335   :  { %v288_v3 = vpack.c.bf16 %v284_v2, %v284_v2 }
 0x337   :  { %663 = vmatmul.mubr.bf16.vlgmr.msra.gmra.mrb[4].mxu0 %v288_v3 }
 0x40a   :  { %v391_v6 = vpop.f32.mrb[4].mxu0 }
 0x40b   :  { %v392_v7 = vadd.f32 %v568_v5, %v391_v6  ;;  %v664_v8 = vpop.f32.mrb[5].mxu0 }
 0x40c   :  { %v394_v9 = vpop.f32.mrb[6].mxu0 }
 0x40d   :  { %v397_v10 = vmax.f32 %v392_v7, 0.0  ;;  %v665_v11 = vpop.f32.mrb[7].mxu0 }
 0x40f   :  { %398 = vadd.xlane.f32.xlu0 %v397_v10  ;;  %v401_v12 = vmul.f32 %v397_v10, %v397_v10 }
 0x411   :  { %402 = vadd.xlane.f32.xlu1 %v401_v12 }
 0x49c   :  { %v399_v20 = vpop.xlane.xlu0 %398 }
 0x49d   :  { %v400_v21 = vmul.f32 0.015625, %v399_v20 }
 0x49e   :  { %v403_v22 = vpop.xlane.xlu1 %402 }
 0x49f   :  { %v405_v23 = vmul.f32 %v400_v21, %v400_v21  ;;  %v404_v24 = vmul.f32 0.015625, %v403_v22  ;;  %v407_v27 = vsub.f32 %v397_v10, %v400_v21 }
 0x4a1   :  { %v406_v25 = vsub.f32 %v404_v24, %v405_v23 }
 0x4a3   :  { %v408_v26 = vadd.f32 1e-05, %v406_v25 }
 0x4a5   :  { %725 = vrsqrt.f32 %v408_v26 }
 0x4af   :  { %v726_v28 = vpop.eup %725 }
 0x4b0   :  { %v410_v30 = vmul.f32 %v726_v28, %v407_v27 }
 0x4b2   :  { %v415_v32 = vmul.f32 %v577_v29, %v410_v30 }
 0x4b4   :  { %v420_v33 = vadd.f32 %v578_v31, %v415_v32 }
 0x4b6   :  { %v421_v34 = vpack.c.bf16 %v420_v33, %v420_v33 }
 0x4b8   :  { %683 = vmatmul.mubr.bf16.vlgmr.msra.gmra.mrb[4].mxu1 %v421_v34 }
 0x58b   :  { %v527_v35 = vpop.f32.mrb[4].mxu1 }
 0x58c   :  { %v528_v36 = vadd.f32 %v579_v0, %v527_v35  ;;  %v684_v37 = vpop.f32.mrb[5].mxu1 }
 0x58d   :  { %v530_v38 = vpop.f32.mrb[6].mxu1 }
 0x58e   :  { %v685_v39 = vpop.f32.mrb[7].mxu1  ;;  %534 = vst.msk [vmem:[#allocation7] sm:$0xff] %vm533_vm2, %v528_v36 }
 0x58f   :  { %782 = shalt.err (!%p779_p6)
}
 0x590   :  { %s783_s6 = scalar_lea.hbm %s985_s7, 128 }
 0x591   :  { %p784_p7 = scmp.ne.s32.totalorder %s985_s7, %s783_s6  ;;  %p787_p8 = scmp.lt.u32.totalorder %s783_s6, %s985_s7 }
 0x593   :  { %p789_p9 = pnand %p787_p8, %p784_p7 }
 0x595   :  { %792 = shalt.err (!%p789_p9)
}
 0x596   :  { %544 = dma.vmem_to_hbm [thread:$0]  %s542_s14, 128, %s985_s7, [#allocation4]  }
 0x597   :  { %797 = dma.done.wait [#allocation4], 128  }
 0x598   :  { %798 = vsyncadd [#allocation4], 4294967168 }
 0x599   :  { %548 = vsyncpa [#allocation3], 1 }
 0x59a   :  { %549 = vsyncpa [#allocation6], 1 }
 0x59b   :  { %550 = vsyncpa [#allocation4], 1 }

</bundles_post_ra>
